<compile_context>
chip_gen: v5e
topology: v5e:2x2
jax: 0.10.0
libtpu: 0.0.40
codegen_flags: <defaults>
</compile_context>

<pallas_src>
import functools
import math

import jax
import jax.numpy as jnp
from jax.experimental import pallas as pl
from jax.experimental.pallas import tpu as pltpu

_LANES = 128
_MAX_ROWS_PER_CHUNK = 512      # (512,128) f32 = 256 KiB per input per buffer


def _partials_kernel(x_ref, y_ref, bce_ref, tp_ref, sp_ref, sy_ref, *, smooth):
    """One (R, 128) chunk -> four (1, 128) lane-wise partial sums."""
    x = x_ref[...].astype(jnp.float32)   # logits
    y = y_ref[...].astype(jnp.float32)   # targets in [0, 1]

    # Label-smoothed target: t = y*(1-s) + (1-y)*s = s + y*(1-2s)
    t = float(smooth) + y * (1.0 - 2.0 * float(smooth))

    # Single shared transcendental for both BCE and sigmoid.
    e = jnp.exp(-jnp.abs(x))
    bce = jnp.maximum(x, 0.0) - x * t + jnp.log1p(e)     # stable BCE-with-logits
    inv = 1.0 / (1.0 + e)
    p = jnp.where(x >= 0.0, inv, e * inv)                # sigmoid(x)

    # Row-axis (sublane) reductions only; cross-lane combine happens outside.
    bce_ref[...] = jnp.sum(bce, axis=0, keepdims=True)
    tp_ref[...] = jnp.sum(p * y, axis=0, keepdims=True)
    sp_ref[...] = jnp.sum(p, axis=0, keepdims=True)
    sy_ref[...] = jnp.sum(y, axis=0, keepdims=True)


def soft_bce_dice_loss(y_pr, y_gt, raito=0.5, smooth_factor=0.1,
                       dice_eps=1e-8, dice_beta=0.5):
    """y_pr (logits), y_gt: same-shape arrays (e.g. NCHW).  Returns scalar loss."""
    assert y_pr.shape == y_gt.shape
    total = math.prod(y_pr.shape)

    rows = -(-total // _LANES)                              # ceil(total/128)
    if rows >= _MAX_ROWS_PER_CHUNK:
        rows_per_chunk = _MAX_ROWS_PER_CHUNK
    else:
        rows_per_chunk = -(-rows // 8) * 8                  # round up to mult of 8
    n_chunks = -(-rows // rows_per_chunk)
    padded_rows = n_chunks * rows_per_chunk
    n_pad = padded_rows * _LANES - total                    # static Python int

    # Free flatten (no transpose, trailing-dim reshape only); pad only if needed.
    pr = jnp.reshape(y_pr, (-1,))
    gt = jnp.reshape(y_gt, (-1,))
    if n_pad:
        pr = jnp.pad(pr, (0, n_pad))                        # pads with 0 logits
        gt = jnp.pad(gt, (0, n_pad))                        # pads with 0 targets
    pr = pr.reshape(padded_rows, _LANES)
    gt = gt.reshape(padded_rows, _LANES)

    kernel = functools.partial(_partials_kernel, smooth=smooth_factor)

    part_shape = jax.ShapeDtypeStruct((n_chunks, _LANES), jnp.float32)
    part_spec = pl.BlockSpec((1, _LANES), lambda i: (i, 0))

    bce_p, tp_p, sp_p, sy_p = pl.pallas_call(
        kernel,
        out_shape=(part_shape, part_shape, part_shape, part_shape),
        grid=(n_chunks,),
        in_specs=[
            pl.BlockSpec((rows_per_chunk, _LANES), lambda i: (i, 0)),
            pl.BlockSpec((rows_per_chunk, _LANES), lambda i: (i, 0)),
        ],
        out_specs=(part_spec, part_spec, part_spec, part_spec),
        compiler_params=pltpu.CompilerParams(
            dimension_semantics=("parallel",),      # disjoint outputs -> megacore OK
            vmem_limit_bytes=32 * 1024 * 1024,
        ),
    )(pr, gt)

    # Final (tiny) cross-lane / cross-chunk combine in plain JAX.
    bce_sum = jnp.sum(bce_p)
    tp = jnp.sum(tp_p)
    sum_pr = jnp.sum(sp_p)
    sum_gt = jnp.sum(sy_p)

    if n_pad:
        # Each padded element has x=0, y=0 -> contributes log(2) to BCE and
        # sigmoid(0)=0.5 to sum_pr (and nothing to tp / sum_gt).  Remove it.
        bce_sum = bce_sum - jnp.float32(n_pad) * jnp.float32(math.log(2.0))
        sum_pr = sum_pr - jnp.float32(0.5 * n_pad)

    bce_mean = bce_sum / jnp.float32(total)
    fp = sum_pr - tp
    fn = sum_gt - tp
    b2 = dice_beta * dice_beta
    score = ((1.0 + b2) * tp + dice_eps) / ((1.0 + b2) * tp + b2 * fn + fp + dice_eps)
    dice_loss = 1.0 - score
    return raito * bce_mean + (1.0 - raito) * dice_loss


def _reference_loss(y_pr, y_gt, raito=0.5, smooth_factor=0.1,
                    dice_eps=1e-8, dice_beta=0.5):
    """Pure-JAX reference mirroring the PyTorch module (for verification)."""
    x = y_pr.astype(jnp.float32)
    y = y_gt.astype(jnp.float32)
    t = y * (1.0 - smooth_factor) + (1.0 - y) * smooth_factor
    bce = jnp.mean(jnp.maximum(x, 0.0) - x * t + jnp.log1p(jnp.exp(-jnp.abs(x))))
    p = jax.nn.sigmoid(x)
    tp = jnp.sum(p * y)
    fp = jnp.sum(p) - tp
    fn = jnp.sum(y) - tp
    b2 = dice_beta * dice_beta
    score = ((1.0 + b2) * tp + dice_eps) / ((1.0 + b2) * tp + b2 * fn + fp + dice_eps)
    return raito * bce + (1.0 - raito) * (1.0 - score)


if __name__ == "__main__":
    key = jax.random.PRNGKey(0)
    k1, k2 = jax.random.split(key)
    N, C, H, W = 2, 4, 16, 16
    y_pr = jax.random.normal(k1, (N, C, H, W), dtype=jnp.float32)            # logits
    y_gt = (jax.random.uniform(k2, (N, C, H, W)) < 0.5).astype(jnp.float32)  # binary targets

    loss = soft_bce_dice_loss(y_pr, y_gt, raito=0.5, smooth_factor=0.1)
    loss = jax.block_until_ready(loss)

    ref = _reference_loss(y_pr, y_gt, raito=0.5, smooth_factor=0.1)
    assert jnp.allclose(loss, ref, rtol=1e-5, atol=1e-5), (loss, ref)

    print("KERNEL_OK")
</pallas_src>

<mosaic_0001>
module attributes {stable_mosaic.version = 11 : i64} {
  func.func @_partials_kernel(%arg0: i32, %arg1: memref<16x128xf32, #tpu.memory_space<vmem>>, %arg2: memref<16x128xf32, #tpu.memory_space<vmem>>, %arg3: memref<1x128xf32, #tpu.memory_space<vmem>>, %arg4: memref<1x128xf32, #tpu.memory_space<vmem>>, %arg5: memref<1x128xf32, #tpu.memory_space<vmem>>, %arg6: memref<1x128xf32, #tpu.memory_space<vmem>>) attributes {dimension_semantics = [#tpu.dimension_semantics<parallel>], iteration_bounds = array<i64: 1>, scalar_prefetch = 0 : i64, scratch_operands = 0 : i64, tpu.core_type = #tpu.core_type<tc>, window_params = [{transform_indices = @transform_0, window_bounds = array<i64: 16, 128>}, {transform_indices = @transform_1, window_bounds = array<i64: 16, 128>}, {transform_indices = @transform_2, window_bounds = array<i64: 1, 128>}, {transform_indices = @transform_3, window_bounds = array<i64: 1, 128>}, {transform_indices = @transform_4, window_bounds = array<i64: 1, 128>}, {transform_indices = @transform_5, window_bounds = array<i64: 1, 128>}]} {
    %c0 = arith.constant 0 : index
    %c0_0 = arith.constant 0 : index
    %0 = vector.load %arg1[%c0, %c0_0] : memref<16x128xf32, #tpu.memory_space<vmem>>, vector<16x128xf32>
    %c0_1 = arith.constant 0 : index
    %c0_2 = arith.constant 0 : index
    %1 = vector.load %arg2[%c0_1, %c0_2] : memref<16x128xf32, #tpu.memory_space<vmem>>, vector<16x128xf32>
    %cst = arith.constant 8.000000e-01 : f32
    %2 = vector.broadcast %cst : f32 to vector<16x128xf32>
    %3 = arith.mulf %1, %2 : vector<16x128xf32>
    %cst_3 = arith.constant 1.000000e-01 : f32
    %4 = vector.broadcast %cst_3 : f32 to vector<16x128xf32>
    %5 = arith.addf %4, %3 : vector<16x128xf32>
    %6 = math.absf %0 : vector<16x128xf32>
    %cst_4 = arith.constant 0.000000e+00 : f32
    %7 = vector.broadcast %cst_4 : f32 to vector<16x128xf32>
    %8 = arith.subf %7, %6 : vector<16x128xf32>
    %9 = math.exp %8 : vector<16x128xf32>
    %cst_5 = arith.constant 0.000000e+00 : f32
    %10 = vector.broadcast %cst_5 : f32 to vector<16x128xf32>
    %11 = arith.maximumf %0, %10 : vector<16x128xf32>
    %12 = arith.mulf %0, %5 : vector<16x128xf32>
    %13 = arith.subf %11, %12 : vector<16x128xf32>
    %14 = math.log1p %9 : vector<16x128xf32>
    %15 = arith.addf %13, %14 : vector<16x128xf32>
    %cst_6 = arith.constant 1.000000e+00 : f32
    %16 = vector.broadcast %cst_6 : f32 to vector<16x128xf32>
    %17 = arith.addf %16, %9 : vector<16x128xf32>
    %cst_7 = arith.constant 1.000000e+00 : f32
    %18 = vector.broadcast %cst_7 : f32 to vector<16x128xf32>
    %19 = arith.divf %18, %17 : vector<16x128xf32>
    %cst_8 = arith.constant 0.000000e+00 : f32
    %20 = vector.broadcast %cst_8 : f32 to vector<16x128xf32>
    %21 = arith.cmpf oge, %0, %20 : vector<16x128xf32>
    %22 = arith.mulf %9, %19 : vector<16x128xf32>
    %23 = arith.select %21, %19, %22 : vector<16x128xi1>, vector<16x128xf32>
    %cst_9 = arith.constant dense<0.000000e+00> : vector<128xf32>
    %24 = vector.multi_reduction <add>, %15, %cst_9 [0] : vector<16x128xf32> to vector<128xf32>
    %25 = vector.shape_cast %24 : vector<128xf32> to vector<1x128xf32>
    %c0_10 = arith.constant 0 : index
    %c0_11 = arith.constant 0 : index
    %26 = vector.load %arg3[%c0_10, %c0_11] : memref<1x128xf32, #tpu.memory_space<vmem>>, vector<1x128xf32>
    tpu.vector_store %arg3[%c0_10, %c0_11], %25 {strides = array<i32>} : memref<1x128xf32, #tpu.memory_space<vmem>>, vector<1x128xf32>,
    %27 = arith.mulf %23, %1 : vector<16x128xf32>
    %cst_12 = arith.constant dense<0.000000e+00> : vector<128xf32>
    %28 = vector.multi_reduction <add>, %27, %cst_12 [0] : vector<16x128xf32> to vector<128xf32>
    %29 = vector.shape_cast %28 : vector<128xf32> to vector<1x128xf32>
    %c0_13 = arith.constant 0 : index
    %c0_14 = arith.constant 0 : index
    %30 = vector.load %arg4[%c0_13, %c0_14] : memref<1x128xf32, #tpu.memory_space<vmem>>, vector<1x128xf32>
    tpu.vector_store %arg4[%c0_13, %c0_14], %29 {strides = array<i32>} : memref<1x128xf32, #tpu.memory_space<vmem>>, vector<1x128xf32>,
    %cst_15 = arith.constant dense<0.000000e+00> : vector<128xf32>
    %31 = vector.multi_reduction <add>, %23, %cst_15 [0] : vector<16x128xf32> to vector<128xf32>
    %32 = vector.shape_cast %31 : vector<128xf32> to vector<1x128xf32>
    %c0_16 = arith.constant 0 : index
    %c0_17 = arith.constant 0 : index
    %33 = vector.load %arg5[%c0_16, %c0_17] : memref<1x128xf32, #tpu.memory_space<vmem>>, vector<1x128xf32>
    tpu.vector_store %arg5[%c0_16, %c0_17], %32 {strides = array<i32>} : memref<1x128xf32, #tpu.memory_space<vmem>>, vector<1x128xf32>,
    %cst_18 = arith.constant dense<0.000000e+00> : vector<128xf32>
    %34 = vector.multi_reduction <add>, %1, %cst_18 [0] : vector<16x128xf32> to vector<128xf32>
    %35 = vector.shape_cast %34 : vector<128xf32> to vector<1x128xf32>
    %c0_19 = arith.constant 0 : index
    %c0_20 = arith.constant 0 : index
    %36 = vector.load %arg6[%c0_19, %c0_20] : memref<1x128xf32, #tpu.memory_space<vmem>>, vector<1x128xf32>
    tpu.vector_store %arg6[%c0_19, %c0_20], %35 {strides = array<i32>} : memref<1x128xf32, #tpu.memory_space<vmem>>, vector<1x128xf32>,
    return
  }
  func.func @transform_0(%arg0: i32) -> (i32, i32) {
    %c0_i32 = arith.constant 0 : i32
    %c0_i32_0 = arith.constant 0 : i32
    return %arg0, %c0_i32 : i32, i32
  }
  func.func @transform_1(%arg0: i32) -> (i32, i32) {
    %c0_i32 = arith.constant 0 : i32
    %c0_i32_0 = arith.constant 0 : i32
    return %arg0, %c0_i32 : i32, i32
  }
  func.func @transform_2(%arg0: i32) -> (i32, i32) {
    %c0_i32 = arith.constant 0 : i32
    %c0_i32_0 = arith.constant 0 : i32
    return %arg0, %c0_i32 : i32, i32
  }
  func.func @transform_3(%arg0: i32) -> (i32, i32) {
    %c0_i32 = arith.constant 0 : i32
    %c0_i32_0 = arith.constant 0 : i32
    return %arg0, %c0_i32 : i32, i32
  }
  func.func @transform_4(%arg0: i32) -> (i32, i32) {
    %c0_i32 = arith.constant 0 : i32
    %c0_i32_0 = arith.constant 0 : i32
    return %arg0, %c0_i32 : i32, i32
  }
  func.func @transform_5(%arg0: i32) -> (i32, i32) {
    %c0_i32 = arith.constant 0 : i32
    %c0_i32_0 = arith.constant 0 : i32
    return %arg0, %c0_i32 : i32, i32
  }
}

</mosaic_0001>

<bundles_post_ra>
// kernel: tpu_custom_call.1
= control target key start
LH: loop header
LB: loop body
LE: loop exit
PB: predicated region body
PF: predicated region fallthrough
CT: control target
= control target key end

     0   :  { %11 = vsyncpa [#allocation3], 0  ;;  %s519_s0 = inlined_call_operand.hbm [shape: f32[16,128], index: 0, kind: input, shape index: {}]   ;;  %s520_s1 = inlined_call_operand.hbm [shape: f32[16,128], index: 1, kind: input, shape index: {}]   ;;  %s521_s2 = inlined_call_operand.hbm [shape: f32[1,128], index: 2, kind: output, shape index: {0}]   ;;  %s522_s3 = inlined_call_operand.hbm [shape: f32[1,128], index: 3, kind: output, shape index: {1}]   ;;  %s523_s4 = inlined_call_operand.hbm [shape: f32[1,128], index: 4, kind: output, shape index: {2}]   ;;  %s524_s5 = inlined_call_operand.hbm [shape: f32[1,128], index: 5, kind: output, shape index: {3}]  }
   0x1   :  { %12 = vsyncpa [#allocation6], 0 }
   0x2   :  { %13 = vsyncpa [#allocation4], 0 }
   0x3   :  { %14 = vsyncpa [#allocation9], 0 }
   0x4   :  { %15 = vsyncpa [#allocation12], 0  ;;  %s20_s20 = sshll.u32 %s519_s0, 4  ;;  %s403_s21 = smov [#allocation2]   ;;  %s21_s20 = int_to_ptr.hbm [resolvable:$true] %s20_s20 }
   0x5   :  { %s22_s22 = sshll.u32 %s403_s21, 4  ;;  %s33_s25 = sshll.u32 %s520_s1, 4  ;;  %s23_s22 = int_to_ptr.vmem [resolvable:$true] %s22_s22  ;;  %s34_s25 = int_to_ptr.hbm [resolvable:$true] %s33_s25 }
   0x6   :  { %s404_s26 = smov 128   ;;  %s405_s27 = smov 8  }
   0x7   :  { %28 = dma.hbm_to_vmem [thread:$0]  %s21_s20, 256, %s23_s22, [#allocation3], %s404_s26, %s404_s26, %s405_s27  }
   0x8   :  { %s406_s28 = smov [#allocation5]  }
   0x9   :  { %s35_s29 = sshll.u32 %s406_s28, 4  ;;  %s36_s29 = int_to_ptr.vmem [resolvable:$true] %s35_s29 }
   0xa   :  { %41 = dma.hbm_to_vmem [thread:$0]  %s34_s25, 256, %s36_s29, [#allocation6], %s404_s26, %s404_s26, %s405_s27  }
   0xb   :  { %393 = dma.done.wait [#allocation3], 256  }
   0xc   :  { %394 = vsyncadd [#allocation3], 4294967040 }
   0xd   :  { %395 = dma.done.wait [#allocation6], 256  }
   0xe   :  { %396 = vsyncadd [#allocation6], 4294967040  ;;  %v447_v0 = vld [vmem:[#allocation2] sm:$0xff]  ;;  %v449_v1 = vld [vmem:[#allocation2 + $0x8] sm:$0xff]  ;;  %s407_s0 = smov [#allocation11]   ;;  %s204_s7 = sshll.u32 %s524_s5, 4  ;;  %s205_s7 = int_to_ptr.hbm [resolvable:$true] %s204_s7 }
   0xf   :  { %v58_v2 = vand.u32 2147483647, %v447_v0  ;;  %v59_v3 = vand.u32 2147483647, %v449_v1  ;;  %v453_v7 = vld [vmem:[#allocation5] sm:$0xff]  ;;  %v455_v8 = vld [vmem:[#allocation5 + $0x8] sm:$0xff] }
  0x10   :  { %v156_v10 = vadd.f32 %v455_v8, %v453_v7  ;;  %v54_v11 = vmul.f32 0.8, %v453_v7  ;;  %v55_v12 = vmul.f32 0.8, %v455_v8  ;;  %v66_v22 = vmax.f32 %v447_v0, 0.0  ;;  %s479_s1 = sshll.u32 %s407_s0, 4  ;;  %s203_s1 = int_to_ptr.vmem [resolvable:$true] %s479_s1 }
  0x11   :  { %v60_v4 = vsub.f32 0.0, %v58_v2  ;;  %v61_v5 = vsub.f32 0.0, %v59_v3  ;;  %v67_v25 = vmax.f32 %v449_v1, 0.0  ;;  %vm124_vm10 = vcmp.ge.f32.partialorder %v447_v0, 0.0  ;;  %s408_s5 = smov [#allocation7]   ;;  %s171_s11 = sshll.u32 %s521_s2, 4  ;;  %s172_s11 = int_to_ptr.hbm [resolvable:$true] %s171_s11 }
  0x12   :  { %v157_v13 = vrot.slane %v156_v10, 4  ;;  %v56_v16 = vadd.f32 0.1, %v54_v11  ;;  %v57_v17 = vadd.f32 0.1, %v55_v12  ;;  %vm125_vm11 = vcmp.ge.f32.partialorder %v449_v1, 0.0 }
  0x13   :  { %v62_v6 = vmul.f32 1.442695, %v60_v4  ;;  %v64_v9 = vmul.f32 1.442695, %v61_v5  ;;  %s169_s8 = sshll.u32 %s408_s5, 4  ;;  %s409_s12 = smov [#allocation8]   ;;  %s170_s8 = int_to_ptr.vmem [resolvable:$true] %s169_s8 }
  0x14   :  { %v158_v14 = vadd.f32 %v157_v13, %v156_v10  ;;  %v68_v26 = vmul.f32 %v56_v16, %v447_v0  ;;  %v69_v27 = vmul.f32 %v57_v17, %v449_v1  ;;  %s180_s13 = sshll.u32 %s409_s12, 4  ;;  %s182_s2 = sshll.u32 %s522_s3, 4  ;;  %s181_s13 = int_to_ptr.vmem [resolvable:$true] %s180_s13  ;;  %s183_s2 = int_to_ptr.hbm [resolvable:$true] %s182_s2 }
  0x15   :  { %237 = vpow2.f32 %v62_v6  ;;  %s410_s16 = smov [#allocation10]   ;;  %s193_s20 = sshll.u32 %s523_s4, 4  ;;  %s194_s20 = int_to_ptr.hbm [resolvable:$true] %s193_s20 }
  0x16   :  { %239 = vpow2.f32 %v64_v9  ;;  %v159_v24 = vrot.slane %v158_v14, 2  ;;  %v70_v32 = vsub.f32 %v66_v22, %v68_v26  ;;  %v71_v33 = vsub.f32 %v67_v25, %v69_v27  ;;  %s191_s17 = sshll.u32 %s410_s16, 4  ;;  %s192_s17 = int_to_ptr.vmem [resolvable:$true] %s191_s17 }
  0x18   :  { %v160_v31 = vadd.f32 %v159_v24, %v158_v14 }
  0x1a   :  { %v161_v38 = vrot.slane %v160_v31, 1 }
  0x1b   :  { %v461_v15 = vpop.eup %237 }
  0x1c   :  { %v463_v18 = vpop.eup %239  ;;  %v72_v19 = vadd.f32 1.0, %v461_v15  ;;  %v75_v21 = vmul.f32 -0.5, %v461_v15  ;;  %v78_v29 = vand.u32 2147483647, %v461_v15  ;;  %v162_v48 = vadd.f32 %v161_v38, %v160_v31 }
  0x1d   :  { %v467_v20 = vadd.f32 1.0, %v463_v18  ;;  %v84_v23 = vmul.f32 -0.5, %v463_v18  ;;  %v87_v34 = vand.u32 2147483647, %v463_v18 }
  0x1e   :  { %241 = vrcp.f32 %v72_v19  ;;  %v76_v28 = vadd.f32 1.0, %v75_v21  ;;  %vm99_vm0 = vweird.f32 %v72_v19  ;;  %v103_v36 = vand.u32 2147483647, %v72_v19  ;;  %163 = vst [vmem:[#allocation11] sm:$0x1] %v162_v48 }
  0x1f   :  { %243 = vrcp.f32 %v467_v20  ;;  %v85_v30 = vadd.f32 1.0, %v84_v23  ;;  %v105_v37 = vand.u32 2147483648, %v72_v19  ;;  %v118_v41 = vand.u32 2147483647, %v467_v20  ;;  %207 = dma.vmem_to_hbm [thread:$0]  %s203_s1, 16, %s205_s7, [#allocation12]  }
  0x20   :  { %245 = vlog2.f32 %v72_v19  ;;  %v120_v42 = vand.u32 2147483648, %v467_v20  ;;  %v77_v43 = vmul.f32 %v461_v15, %v76_v28  ;;  %vm488_vm1 = vcmp.lt.f32.partialorder %v78_v29, 0.0004427343 }
  0x21   :  { %247 = vlog2.f32 %v467_v20  ;;  %v86_v47 = vmul.f32 %v463_v18, %v85_v30  ;;  %vm494_vm3 = vcmp.lt.f32.partialorder %v87_v34, 0.0004427343  ;;  %vm114_vm4 = vweird.f32 %v467_v20 }
  0x22   :  { %v106_v57 = vor.u32 1.1754944e-38, %v105_v37  ;;  %vm104_vm7 = vcmp.eq.f32.partialorder %v103_v36, 8.507059e+37  ;;  %v121_v62 = vor.u32 1.1754944e-38, %v120_v42  ;;  %vm119_vm9 = vcmp.eq.f32.partialorder %v118_v41, 8.507059e+37 }
  0x24   :  { %v242_v35 = vpop.eup %241 }
  0x25   :  { %v244_v39 = vpop.eup %243  ;;  %v95_v40 = vmul.f32 %v242_v35, %v72_v19  ;;  %vm100_vm2 = vweird.f32 %v242_v35 }
  0x26   :  { %v246_v44 = vpop.eup %245  ;;  %v110_v45 = vmul.f32 %v244_v39, %v467_v20  ;;  %vm115_vm5 = vweird.f32 %v244_v39  ;;  %vm101_vm6 = vmor %vm99_vm0, %vm100_vm2 }
  0x27   :  { %v248_v49 = vpop.eup %247  ;;  %v96_v50 = vsub.f32 1.0, %v95_v40  ;;  %v74_v51 = vmul.f32 0.6931472, %v246_v44  ;;  %vm116_vm8 = vmor %vm114_vm4, %vm115_vm5 }
  0x28   :  { %v111_v53 = vsub.f32 1.0, %v110_v45  ;;  %v83_v54 = vmul.f32 0.6931472, %v248_v49 }
  0x29   :  { %v97_v55 = vmul.f32 %v242_v35, %v96_v50  ;;  %v80_v56 = vsel %vm488_vm1, %v77_v43, %v74_v51 }
  0x2a   :  { %v112_v58 = vmul.f32 %v244_v39, %v111_v53  ;;  %v89_v59 = vsel %vm494_vm3, %v86_v47, %v83_v54  ;;  %v90_v60 = vadd.f32 %v80_v56, %v70_v32 }
  0x2b   :  { %v98_v61 = vadd.f32 %v242_v35, %v97_v55  ;;  %v91_v63 = vadd.f32 %v89_v59, %v71_v33 }
  0x2c   :  { %v113_v2 = vadd.f32 %v244_v39, %v112_v58 }
  0x2d   :  { %v102_v3 = vsel %vm101_vm6, %v242_v35, %v98_v61  ;;  %v130_v4 = vadd.f32 %v91_v63, %v90_v60 }
  0x2e   :  { %v107_v5 = vsel %vm104_vm7, %v106_v57, %v102_v3  ;;  %v117_v6 = vsel %vm116_vm8, %v244_v39, %v113_v2 }
  0x2f   :  { %v122_v9 = vsel %vm119_vm9, %v121_v62, %v117_v6  ;;  %v126_v10 = vmul.f32 %v461_v15, %v107_v5  ;;  %v131_v11 = vrot.slane %v130_v4, 4 }
  0x30   :  { %v127_v12 = vmul.f32 %v463_v18, %v122_v9 }
  0x31   :  { %v128_v13 = vsel %vm124_vm10, %v107_v5, %v126_v10  ;;  %v132_v14 = vadd.f32 %v131_v11, %v130_v4 }
  0x32   :  { %v129_v16 = vsel %vm125_vm11, %v122_v9, %v127_v12  ;;  %v138_v17 = vmul.f32 %v128_v13, %v453_v7 }
  0x33   :  { %v139_v19 = vmul.f32 %v129_v16, %v455_v8  ;;  %v133_v20 = vrot.slane %v132_v14, 2  ;;  %v148_v21 = vadd.f32 %v129_v16, %v128_v13 }
  0x35   :  { %v140_v22 = vadd.f32 %v139_v19, %v138_v17  ;;  %v134_v23 = vadd.f32 %v133_v20, %v132_v14  ;;  %v149_v0 = vrot.slane %v148_v21, 4 }
  0x37   :  { %v141_v1 = vrot.slane %v140_v22, 4  ;;  %v135_v15 = vrot.slane %v134_v23, 1  ;;  %v150_v18 = vadd.f32 %v149_v0, %v148_v21 }
  0x39   :  { %v142_v24 = vadd.f32 %v141_v1, %v140_v22  ;;  %v136_v25 = vadd.f32 %v135_v15, %v134_v23  ;;  %v151_v26 = vrot.slane %v150_v18, 2 }
  0x3b   :  { %v143_v7 = vrot.slane %v142_v24, 2  ;;  %137 = vst [vmem:[#allocation7] sm:$0x1] %v136_v25  ;;  %v152_v8 = vadd.f32 %v151_v26, %v150_v18 }
  0x3c   :  { %174 = dma.vmem_to_hbm [thread:$0]  %s170_s8, 16, %s172_s11, [#allocation4]  }
  0x3d   :  { %v144_v27 = vadd.f32 %v143_v7, %v142_v24  ;;  %v153_v28 = vrot.slane %v152_v8, 1 }
  0x3f   :  { %v145_v29 = vrot.slane %v144_v27, 1  ;;  %v154_v30 = vadd.f32 %v153_v28, %v152_v8 }
  0x41   :  { %v146_v31 = vadd.f32 %v145_v29, %v144_v27  ;;  %155 = vst [vmem:[#allocation10] sm:$0x1] %v154_v30 }
  0x43   :  { %147 = vst [vmem:[#allocation8] sm:$0x1] %v146_v31 }
  0x44   :  { %185 = dma.vmem_to_hbm [thread:$0]  %s181_s13, 16, %s183_s2, [#allocation9]  }
  0x45   :  { %196 = dma.vmem_to_hbm [thread:$0]  %s192_s17, 16, %s194_s20, [#allocation9]  }
  0x46   :  { %397 = dma.done.wait [#allocation4], 16  }
  0x47   :  { %398 = vsyncadd [#allocation4], 4294967280 }
  0x48   :  { %399 = dma.done.wait [#allocation9], 32  }
  0x49   :  { %400 = vsyncadd [#allocation9], 4294967264 }
  0x4a   :  { %401 = dma.done.wait [#allocation12], 16  }
  0x4b   :  { %402 = vsyncadd [#allocation12], 4294967280 }
  0x4c   :  { %224 = vsyncpa [#allocation3], 1 }
  0x4d   :  { %225 = vsyncpa [#allocation6], 1 }
  0x4e   :  { %226 = vsyncpa [#allocation4], 1 }
  0x4f   :  { %227 = vsyncpa [#allocation9], 1 }
  0x50   :  { %228 = vsyncpa [#allocation12], 1 }

</bundles_post_ra>
